<compile_context>
chip_gen: v7x
topology: tpu7x:2x2x1
jax: 0.10.0
libtpu: 0.0.40
codegen_flags: <defaults>
</compile_context>

<pallas_src>
import functools
import math

import jax
import jax.numpy as jnp
from jax import lax
from jax.experimental import pallas as pl
from jax.experimental.pallas import tpu as pltpu

_EPS = 1e-6
_LANE = 128
_SUBLANE = 8


def _round_up(x, m):
    return (x + m - 1) // m * m


def _kl_row_kernel(pred_ref, targ_ref, out_ref, *, hw, hw_padded):
    """Per-row KL contribution for one block of rows (rb, hw_padded)."""
    b = pred_ref[...].astype(jnp.float32) + _EPS   # pred  + eps
    a = targ_ref[...].astype(jnp.float32) + _EPS   # target + eps

    if hw != hw_padded:
        cols = lax.broadcasted_iota(jnp.int32, a.shape, 1)
        valid = cols < hw
        a_s = jnp.where(valid, a, 0.0)
        b_s = jnp.where(valid, b, 0.0)
    else:
        valid = None
        a_s, b_s = a, b

    s_t = jnp.sum(a_s, axis=-1, keepdims=True)     # (rb, 1)  sum(target+eps)
    s_p = jnp.sum(b_s, axis=-1, keepdims=True)     # (rb, 1)  sum(pred+eps)

    c = a * (jnp.log(a) - jnp.log(b))              # padded cols: a == b -> exactly 0
    if valid is not None:
        c = jnp.where(valid, c, 0.0)
    s_c = jnp.sum(c, axis=-1, keepdims=True)       # (rb, 1)

    # KL_row = Sc/St + log(Sp) - log(St); zero-padded rows give exactly 0.
    out_ref[...] = s_c / s_t + jnp.log(s_p) - jnp.log(s_t)


def kl_divergence_loss(pred, target, *, target_block_bytes=2 * 1024 * 1024):
    """Pallas implementation of KLDivergenceLoss.forward for N...HW inputs."""
    assert pred.shape == target.shape
    n = pred.shape[0]
    hw = pred.shape[-2] * pred.shape[-1]
    rows = math.prod(pred.shape[:-2])              # N*C maps, each normalized

    hw_p = _round_up(hw, _LANE)

    # Row-block sizing: as many rows as fit ~target_block_bytes per input,
    # balanced across blocks so row padding stays minimal.
    bytes_per_row = hw_p * 4                       # f32 working set in VMEM
    rb_max = max(_SUBLANE,
                 (target_block_bytes // bytes_per_row) // _SUBLANE * _SUBLANE)
    num_blocks = -(-rows // rb_max)
    rb = _round_up(-(-rows // num_blocks), _SUBLANE)
    rows_p = rb * num_blocks

    pred2 = jnp.reshape(pred, (rows, hw))
    targ2 = jnp.reshape(target, (rows, hw))
    if (rows_p, hw_p) != (rows, hw):
        pad = ((0, rows_p - rows), (0, hw_p - hw))
        pred2 = jnp.pad(pred2, pad)                # zero padding -> KL contribution 0
        targ2 = jnp.pad(targ2, pad)

    in_bytes = 2 * rows_p * hw_p * pred2.dtype.itemsize
    cost = pl.CostEstimate(
        flops=10 * rows_p * hw_p,
        transcendentals=2 * rows_p * hw_p + 2 * rows_p,
        bytes_accessed=in_bytes + rows_p * 4,
    )

    row_kl = pl.pallas_call(
        functools.partial(_kl_row_kernel, hw=hw, hw_padded=hw_p),
        out_shape=jax.ShapeDtypeStruct((rows_p, 1), jnp.float32),
        grid_spec=pltpu.PrefetchScalarGridSpec(
            num_scalar_prefetch=0,
            grid=(num_blocks,),
            in_specs=[
                pl.BlockSpec((rb, hw_p), lambda i: (i, 0)),
                pl.BlockSpec((rb, hw_p), lambda i: (i, 0)),
            ],
            out_specs=pl.BlockSpec((rb, 1), lambda i: (i, 0)),
        ),
        compiler_params=pltpu.CompilerParams(
            dimension_semantics=("parallel",),      # blocks independent -> megacore
            vmem_limit_bytes=32 * 1024 * 1024,
        ),
        cost_estimate=cost,
    )(pred2, targ2)

    # 'batchmean': total KL sum divided by batch size N.
    return jnp.sum(row_kl) / jnp.float32(n)


def _reference(pred, target):
    p = pred + _EPS
    t = target + _EPS
    p = p / jnp.sum(p, axis=(-2, -1), keepdims=True)
    t = t / jnp.sum(t, axis=(-2, -1), keepdims=True)
    return jnp.sum(t * (jnp.log(t) - jnp.log(p))) / pred.shape[0]


if __name__ == "__main__":
    key = jax.random.PRNGKey(0)
    k1, k2, k3, k4 = jax.random.split(key, 4)

    # Aligned NCHW shape: batch=2, channels=4, spatial=16x16.
    pred = jax.random.uniform(k1, (2, 4, 16, 16), dtype=jnp.float32)
    target = jax.random.uniform(k2, (2, 4, 16, 16), dtype=jnp.float32)
    loss = jax.block_until_ready(kl_divergence_loss(pred, target))
    ref = _reference(pred, target)
    assert jnp.allclose(loss, ref, rtol=1e-4, atol=1e-5), (loss, ref)

    # Unaligned shape: exercises hw padding (100 -> 128) and row padding (6 -> 8).
    pred_u = jax.random.uniform(k3, (2, 3, 10, 10), dtype=jnp.float32)
    target_u = jax.random.uniform(k4, (2, 3, 10, 10), dtype=jnp.float32)
    loss_u = jax.block_until_ready(kl_divergence_loss(pred_u, target_u))
    ref_u = _reference(pred_u, target_u)
    assert jnp.allclose(loss_u, ref_u, rtol=1e-4, atol=1e-5), (loss_u, ref_u)

    print("KERNEL_OK")
</pallas_src>

<mosaic_0001>
module attributes {stable_mosaic.version = 11 : i64} {
  func.func @_kl_row_kernel(%arg0: i32, %arg1: memref<8x256xf32, #tpu.memory_space<vmem>>, %arg2: memref<8x256xf32, #tpu.memory_space<vmem>>, %arg3: memref<8x1xf32, #tpu.memory_space<vmem>>) attributes {dimension_semantics = [#tpu.dimension_semantics<parallel>], iteration_bounds = array<i64: 1>, scalar_prefetch = 0 : i64, scratch_operands = 0 : i64, tpu.core_type = #tpu.core_type<tc>, window_params = [{transform_indices = @transform_0, window_bounds = array<i64: 8, 256>}, {transform_indices = @transform_1, window_bounds = array<i64: 8, 256>}, {transform_indices = @transform_2, window_bounds = array<i64: 8, 1>}]} {
    %c0 = arith.constant 0 : index
    %c0_0 = arith.constant 0 : index
    %0 = vector.load %arg1[%c0, %c0_0] : memref<8x256xf32, #tpu.memory_space<vmem>>, vector<8x256xf32>
    %cst = arith.constant 9.99999997E-7 : f32
    %1 = vector.broadcast %cst : f32 to vector<8x256xf32>
    %2 = arith.addf %0, %1 : vector<8x256xf32>
    %c0_1 = arith.constant 0 : index
    %c0_2 = arith.constant 0 : index
    %3 = vector.load %arg2[%c0_1, %c0_2] : memref<8x256xf32, #tpu.memory_space<vmem>>, vector<8x256xf32>
    %cst_3 = arith.constant 9.99999997E-7 : f32
    %4 = vector.broadcast %cst_3 : f32 to vector<8x256xf32>
    %5 = arith.addf %3, %4 : vector<8x256xf32>
    %cst_4 = arith.constant dense<0.000000e+00> : vector<8xf32>
    %6 = vector.multi_reduction <add>, %5, %cst_4 [1] : vector<8x256xf32> to vector<8xf32>
    %7 = vector.shape_cast %6 : vector<8xf32> to vector<8x1xf32>
    %cst_5 = arith.constant dense<0.000000e+00> : vector<8xf32>
    %8 = vector.multi_reduction <add>, %2, %cst_5 [1] : vector<8x256xf32> to vector<8xf32>
    %9 = vector.shape_cast %8 : vector<8xf32> to vector<8x1xf32>
    %10 = math.log %5 : vector<8x256xf32>
    %11 = math.log %2 : vector<8x256xf32>
    %12 = arith.subf %10, %11 : vector<8x256xf32>
    %13 = arith.mulf %5, %12 : vector<8x256xf32>
    %cst_6 = arith.constant dense<0.000000e+00> : vector<8xf32>
    %14 = vector.multi_reduction <add>, %13, %cst_6 [1] : vector<8x256xf32> to vector<8xf32>
    %15 = vector.shape_cast %14 : vector<8xf32> to vector<8x1xf32>
    %16 = arith.divf %15, %7 : vector<8x1xf32>
    %17 = math.log %9 : vector<8x1xf32>
    %18 = arith.addf %16, %17 : vector<8x1xf32>
    %19 = math.log %7 : vector<8x1xf32>
    %20 = arith.subf %18, %19 : vector<8x1xf32>
    %c0_7 = arith.constant 0 : index
    %c0_8 = arith.constant 0 : index
    %21 = vector.load %arg3[%c0_7, %c0_8] : memref<8x1xf32, #tpu.memory_space<vmem>>, vector<8x1xf32>
    tpu.vector_store %arg3[%c0_7, %c0_8], %20 {strides = array<i32>} : memref<8x1xf32, #tpu.memory_space<vmem>>, vector<8x1xf32>,
    return
  }
  func.func @transform_0(%arg0: i32) -> (i32, i32) {
    %c0_i32 = arith.constant 0 : i32
    %c0_i32_0 = arith.constant 0 : i32
    return %arg0, %c0_i32 : i32, i32
  }
  func.func @transform_1(%arg0: i32) -> (i32, i32) {
    %c0_i32 = arith.constant 0 : i32
    %c0_i32_0 = arith.constant 0 : i32
    return %arg0, %c0_i32 : i32, i32
  }
  func.func @transform_2(%arg0: i32) -> (i32, i32) {
    %c0_i32 = arith.constant 0 : i32
    %c0_i32_0 = arith.constant 0 : i32
    return %arg0, %c0_i32 : i32, i32
  }
}

</mosaic_0001>

<bundles_post_ra>
// kernel: tpu_custom_call.1
= control target key start
LH: loop header
LB: loop body
LE: loop exit
PB: predicated region body
PF: predicated region fallthrough
CT: control target
= control target key end

     0   :  { %7 = vsyncpa [#allocation3], 0  ;;  %s188_s0 = inlined_call_operand.hbm [shape: f32[8,256], index: 0, kind: input, shape index: {}]   ;;  %s189_s1 = inlined_call_operand.hbm [shape: f32[8,256], index: 1, kind: input, shape index: {}]   ;;  %s190_s2 = inlined_call_operand.vmem [shape: f32[8,1], index: 2, kind: output, shape index: {}]  }
   0x1   :  { %8 = vsyncpa [#allocation5], 0  ;;  %s144_s9 = smov [#allocation2]   ;;  %s145_s11 = smov [#allocation4]  }
   0x2   :  { %s15_s10 = sshll.u32 %s144_s9, 4  ;;  %s25_s12 = sshll.u32 %s145_s11, 4  ;;  %s16_s10 = int_to_ptr.vmem [resolvable:$true] %s15_s10  ;;  %s26_s12 = int_to_ptr.vmem [resolvable:$true] %s25_s12 }
   0x3   :  { %s96_s15 = scalar_lea.hbm %s188_s0, 256 }
   0x4   :  { %p97_p0 = scmp.ne.s32.totalorder %s188_s0, %s96_s15  ;;  %p100_p1 = scmp.lt.u32.totalorder %s96_s15, %s188_s0 }
   0x6   :  { %p102_p2 = pnand %p100_p1, %p97_p0 }
   0x8   :  { %105 = shalt.err (!%p102_p2)
}
   0x9   :  { %s106_s20 = scalar_lea.vmem %s16_s10, 256  ;;  %p111_p4 = scmp.lt.s32.totalorder %s16_s10, %s16_s10 }
   0xa   :  { %p107_p3 = scmp.ne.s32.totalorder %s16_s10, %s106_s20  ;;  %p112_p5 = scmp.lt.s32.totalorder %s106_s20, %s106_s20 }
   0xc   :  { %p113_p6 = por %p112_p5, %p111_p4 }
   0xe   :  { %p114_p7 = pnand %p113_p6, %p107_p3 }
  0x10   :  { %117 = shalt.err (!%p114_p7)
}
  0x11   :  { %18 = dma.hbm_to_vmem [thread:$0]  %s188_s0, 256, %s16_s10, [#allocation3]  }
  0x12   :  { %s118_s25 = scalar_lea.hbm %s189_s1, 256 }
  0x13   :  { %p119_p8 = scmp.ne.s32.totalorder %s189_s1, %s118_s25  ;;  %p122_p9 = scmp.lt.u32.totalorder %s118_s25, %s189_s1 }
  0x15   :  { %p124_p10 = pnand %p122_p9, %p119_p8 }
  0x17   :  { %127 = shalt.err (!%p124_p10)
}
  0x18   :  { %s128_s30 = scalar_lea.vmem %s26_s12, 256  ;;  %p133_p12 = scmp.lt.s32.totalorder %s26_s12, %s26_s12 }
  0x19   :  { %p129_p11 = scmp.ne.s32.totalorder %s26_s12, %s128_s30  ;;  %p134_p13 = scmp.lt.s32.totalorder %s128_s30, %s128_s30 }
  0x1b   :  { %p135_p0 = por %p134_p13, %p133_p12 }
  0x1d   :  { %p136_p1 = pnand %p135_p0, %p129_p11 }
  0x1f   :  { %139 = shalt.err (!%p136_p1)
}
  0x20   :  { %28 = dma.hbm_to_vmem [thread:$0]  %s189_s1, 256, %s26_s12, [#allocation5]  }
  0x21   :  { %140 = dma.done.wait [#allocation3], 256  }
  0x22   :  { %141 = vsyncadd [#allocation3], 4294967040 }
  0x23   :  { %142 = dma.done.wait [#allocation5], 256  }
  0x24   :  { %143 = vsyncadd [#allocation5], 4294967040  ;;  %v39_v0 = vld [vmem:[#allocation4] sm:$0xff]  ;;  %v40_v1 = vld [vmem:[#allocation4 + $0x8] sm:$0xff]  ;;  %vm72_vm0 = vcmask 7168  }
  0x25   :  { %v35_v2 = vld [vmem:[#allocation2] sm:$0xff]  ;;  %v41_v3 = vadd.f32 1e-06, %v39_v0  ;;  %v42_v4 = vadd.f32 1e-06, %v40_v1  ;;  %v36_v5 = vld [vmem:[#allocation2 + $0x8] sm:$0xff] }
  0x26   :  { %v37_v6 = vadd.f32 1e-06, %v35_v2  ;;  %v38_v7 = vadd.f32 1e-06, %v36_v5 }
  0x27   :  { %v43_v8 = vadd.f32 %v42_v4, %v41_v3  ;;  %82 = vlog2.f32 %v41_v3 }
  0x28   :  { %84 = vlog2.f32 %v37_v6  ;;  %v46_v9 = vadd.f32 %v38_v7, %v37_v6 }
  0x29   :  { %44 = vadd.xlane.f32.xlu0 %v43_v8  ;;  %86 = vlog2.f32 %v38_v7 }
  0x2a   :  { %88 = vlog2.f32 %v42_v4 }
  0x2d   :  { %47 = vadd.xlane.f32.xlu0 %v46_v9 }
  0x31   :  { %v83_v10 = vpop.eup %82 }
  0x32   :  { %v85_v11 = vpop.eup %84  ;;  %v50_v12 = vmul.f32 0.6931472, %v83_v10 }
  0x33   :  { %v87_v13 = vpop.eup %86  ;;  %v54_v14 = vmul.f32 0.6931472, %v85_v11 }
  0x34   :  { %v89_v15 = vpop.eup %88  ;;  %v56_v16 = vmul.f32 0.6931472, %v87_v13 }
  0x35   :  { %v52_v17 = vmul.f32 0.6931472, %v89_v15  ;;  %v57_v18 = vsub.f32 %v50_v12, %v54_v14 }
  0x37   :  { %v58_v19 = vsub.f32 %v52_v17, %v56_v16  ;;  %v59_v20 = vmul.f32 %v57_v18, %v41_v3 }
  0x39   :  { %v60_v21 = vmul.f32 %v58_v19, %v42_v4 }
  0x3b   :  { %v61_v22 = vadd.f32 %v60_v21, %v59_v20 }
  0x3d   :  { %62 = vadd.xlane.f32.xlu1 %v61_v22 }
  0xb6   :  { %v45_v23 = vpop.xlane.xlu0 %44 }
  0xba   :  { %v48_v24 = vpop.xlane.xlu0 %47 }
  0xbb   :  { %90 = vlog2.f32 %v48_v24 }
  0xbc   :  { %92 = vrcp.f32 %v45_v23 }
  0xbd   :  { %94 = vlog2.f32 %v45_v23 }
  0xc5   :  { %v91_v25 = vpop.eup %90 }
  0xc6   :  { %v93_v26 = vpop.eup %92  ;;  %v67_v27 = vmul.f32 0.6931472, %v91_v25 }
  0xc7   :  { %v95_v28 = vpop.eup %94 }
  0xc8   :  { %v70_v31 = vmul.f32 0.6931472, %v95_v28 }
  0xca   :  { %v63_v29 = vpop.xlane.xlu1 %62 }
  0xcb   :  { %v65_v30 = vmul.f32 %v93_v26, %v63_v29 }
  0xcd   :  { %v68_v32 = vadd.f32 %v67_v27, %v65_v30 }
  0xcf   :  { %v71_v33 = vsub.f32 %v68_v32, %v70_v31 }
  0xd1   :  { %73 = vst.msk [vmem:[%s190_s2] sm:$0xff] %vm72_vm0, %v71_v33 }
  0xd2   :  { %78 = vsyncpa [#allocation3], 1 }
  0xd3   :  { %79 = vsyncpa [#allocation5], 1 }

</bundles_post_ra>
